<compile_context>
chip_gen: v5e
topology: v5e:2x2
jax: 0.10.0
libtpu: 0.0.40
codegen_flags: <defaults>
</compile_context>

<pallas_src>
import jax
import jax.numpy as jnp
from jax import lax
from jax.experimental import pallas as pl
from jax.experimental.pallas import tpu as pltpu

EPS = 1e-5


# --------------------------------------------------------------------------- #
# Kernel 1: BatchNorm batch statistics -> per-channel affine (scale, shift).
#   x_ref: (C, N*H*W)  -- channels on sublanes, flattened batch*spatial on lanes.
# --------------------------------------------------------------------------- #
def _bn_stats_kernel(x_ref, gamma_ref, beta_ref, scale_ref, shift_ref):
    x = x_ref[...].astype(jnp.float32)                         # (C, N*H*W)
    mean = jnp.mean(x, axis=1, keepdims=True)                  # (C, 1)
    var = jnp.mean((x - mean) ** 2, axis=1, keepdims=True)     # biased (training mode)
    scale = gamma_ref[...] * lax.rsqrt(var + EPS)              # (C, 1)
    scale_ref[...] = scale
    shift_ref[...] = beta_ref[...] - mean * scale


# --------------------------------------------------------------------------- #
# Kernel 2: fused  conv1(relu(bn1(x))) + conv0(x)  for one batch sample.
#   xpad_ref : (Cin, H+2, W+2)  zero-padded sample, channels leading
#   wstk_ref : (Cout, 18*Cin)   bf16, both convs' taps stacked along K
#   scale/shift_ref : (Cin,1,1) folded BN affine (from kernel 1)
#   bias_ref : (Cout, 1)        pre-combined b0 + b1
#   out_ref  : (Cout, H*W)      lane-dense output tile
#   patch_ref: (18*Cin, H*W)    im2col scratch, one aligned 2*Cin-row store per tap
# --------------------------------------------------------------------------- #
def _residual_conv_kernel(xpad_ref, wstk_ref, scale_ref, shift_ref, bias_ref,
                          out_ref, patch_ref):
    Cin, Hp, Wp = xpad_ref.shape
    H, W = Hp - 2, Wp - 2
    HW = H * W

    xpad = xpad_ref[...].astype(jnp.float32)                   # (Cin, Hp, Wp)

    # BN (precomputed batch affine) + ReLU; the 1-pixel halo is re-zeroed with an
    # iota mask instead of round-tripping a zero-initialised padded scratch.
    row = lax.broadcasted_iota(jnp.int32, (Cin, Hp, Wp), 1)
    col = lax.broadcasted_iota(jnp.int32, (Cin, Hp, Wp), 2)
    interior = (row >= 1) & (row <= H) & (col >= 1) & (col <= W)
    yact = jnp.maximum(xpad * scale_ref[...] + shift_ref[...], 0.0)
    yact = jnp.where(interior, yact, 0.0)

    # Both conv paths share the 3x3 tap geometry: stack them on the channel axis
    # and im2col once (9 aligned slab stores instead of 18 slice+matmul pairs).
    z = jnp.concatenate([yact, xpad], axis=0)                  # (2*Cin, Hp, Wp)
    for t in range(9):
        ky, kx = t // 3, t % 3
        patch_ref[pl.ds(t * 2 * Cin, 2 * Cin), :] = (
            z[:, ky:ky + H, kx:kx + W].reshape(2 * Cin, HW))

    # One MXU contraction = conv1 + conv0 + residual add.  bf16 operands,
    # f32 accumulation; output lanes = H*W (lane-dense, unmasked stores).
    acc = jnp.dot(wstk_ref[...],
                  patch_ref[...].astype(jnp.bfloat16),
                  preferred_element_type=jnp.float32)          # (Cout, HW)
    out_ref[...] = (acc + bias_ref[...]).astype(out_ref.dtype)


def residual_forward(x_nchw, w0_oihw, b0, w1_oihw, b1, gamma1, beta1):
    """out = conv1(relu(bn1(x))) + conv0(x); NCHW in / NCHW out (like the module)."""
    N, C, H, W = x_nchw.shape
    Cout = w0_oihw.shape[0]
    Hp, Wp, HW = H + 2, W + 2, H * W

    # ---- wrapper-side layout plumbing only (reshape / transpose / pad) ---------
    x_cm = jnp.transpose(x_nchw, (1, 0, 2, 3)).reshape(C, N * H * W)
    xpad = jnp.pad(x_nchw, ((0, 0), (0, 0), (1, 1), (1, 1)))        # (N, C, Hp, Wp)

    # Stack both convs' weights into one (Cout, 18*C) bf16 matrix whose K ordering
    # matches the im2col rows: k = (ky*3+kx)*2C + {0: conv1, 1: conv0}*C + c.
    w1_p = jnp.transpose(w1_oihw, (2, 3, 1, 0))                     # (3,3,Cin,Cout)
    w0_p = jnp.transpose(w0_oihw, (2, 3, 1, 0))
    wstk = (jnp.stack([w1_p, w0_p], axis=2)                         # (3,3,2,Cin,Cout)
            .reshape(18 * C, Cout).T.astype(jnp.bfloat16))          # (Cout, 18*C)

    gamma2 = gamma1.reshape(C, 1).astype(jnp.float32)
    beta2 = beta1.reshape(C, 1).astype(jnp.float32)
    bias = (b0 + b1).reshape(Cout, 1).astype(jnp.float32)           # pre-combined

    # ---- kernel 1: BN batch stats -> per-channel (scale, shift) ----------------
    scale2, shift2 = pl.pallas_call(
        _bn_stats_kernel,
        out_shape=(jax.ShapeDtypeStruct((C, 1), jnp.float32),
                   jax.ShapeDtypeStruct((C, 1), jnp.float32)),
        in_specs=[pl.BlockSpec(memory_space=pltpu.MemorySpace.VMEM)] * 3,
        out_specs=(pl.BlockSpec(memory_space=pltpu.MemorySpace.VMEM),
                   pl.BlockSpec(memory_space=pltpu.MemorySpace.VMEM)),
    )(x_cm, gamma2, beta2)
    scale3 = scale2.reshape(C, 1, 1)
    shift3 = shift2.reshape(C, 1, 1)

    # ---- kernel 2: fused convs; grid over batch ("parallel" -> both v7x TCs) ---
    out_flat = pl.pallas_call(
        _residual_conv_kernel,
        out_shape=jax.ShapeDtypeStruct((N, Cout, HW), x_nchw.dtype),
        grid_spec=pltpu.PrefetchScalarGridSpec(
            num_scalar_prefetch=0,
            grid=(N,),
            in_specs=[
                pl.BlockSpec((None, C, Hp, Wp), lambda n: (n, 0, 0, 0)),
                pl.BlockSpec((Cout, 18 * C), lambda n: (0, 0)),
                pl.BlockSpec((C, 1, 1), lambda n: (0, 0, 0)),
                pl.BlockSpec((C, 1, 1), lambda n: (0, 0, 0)),
                pl.BlockSpec((Cout, 1), lambda n: (0, 0)),
            ],
            out_specs=pl.BlockSpec((None, Cout, HW), lambda n: (n, 0, 0)),
            scratch_shapes=[pltpu.VMEM((18 * C, HW), jnp.float32)],
        ),
        compiler_params=pltpu.CompilerParams(
            dimension_semantics=("parallel",),
            vmem_limit_bytes=32 * 1024 * 1024,
        ),
    )(xpad, wstk, scale3, shift3, bias)

    return out_flat.reshape(N, Cout, H, W)                          # already NCHW


def residual_reference(x_nchw, w0, b0, w1, b1, gamma1, beta1):
    """Pure-JAX f32 reference (NCHW) for validation."""
    mean = jnp.mean(x_nchw, axis=(0, 2, 3), keepdims=True)
    var = jnp.mean((x_nchw - mean) ** 2, axis=(0, 2, 3), keepdims=True)
    xhat = (x_nchw - mean) / jnp.sqrt(var + EPS)
    y = jnp.maximum(xhat * gamma1.reshape(1, -1, 1, 1) + beta1.reshape(1, -1, 1, 1), 0.0)

    def conv(inp, w, b):
        o = lax.conv_general_dilated(inp, w, (1, 1), "SAME",
                                     dimension_numbers=("NCHW", "OIHW", "NCHW"))
        return o + b.reshape(1, -1, 1, 1)

    return conv(y, w1, b1) + conv(x_nchw, w0, b0)


if __name__ == "__main__":
    # in_channels == out_channels is required by the module's own bn1(x) usage.
    N, C, H, W = 2, 4, 16, 16
    key = jax.random.PRNGKey(0)
    k_x, k_w0, k_b0, k_w1, k_b1 = jax.random.split(key, 5)

    x = jax.random.normal(k_x, (N, C, H, W), jnp.float32)

    fan_in = C * 3 * 3
    bound = 1.0 / (fan_in ** 0.5)  # PyTorch Conv2d default init bound
    w0 = jax.random.uniform(k_w0, (C, C, 3, 3), jnp.float32, -bound, bound)
    b0 = jax.random.uniform(k_b0, (C,), jnp.float32, -bound, bound)
    w1 = jax.random.uniform(k_w1, (C, C, 3, 3), jnp.float32, -bound, bound)
    b1 = jax.random.uniform(k_b1, (C,), jnp.float32, -bound, bound)
    gamma1 = jnp.ones((C,), jnp.float32)   # BatchNorm2d default affine params
    beta1 = jnp.zeros((C,), jnp.float32)

    out = residual_forward(x, w0, b0, w1, b1, gamma1, beta1)
    out = jax.block_until_ready(out)

    ref = residual_reference(x, w0, b0, w1, b1, gamma1, beta1)
    assert out.shape == (N, C, H, W), out.shape
    # bf16 MXU operands (f32 accumulate) vs the pure-f32 reference -> ~1e-2-scale
    # absolute differences are expected; real layout/weight-stacking bugs are >=0.1.
    max_err = float(jnp.max(jnp.abs(out - ref)))
    assert max_err < 3e-2, f"max abs err {max_err}"

    print("KERNEL_OK")
</pallas_src>

<mosaic_0001>
module attributes {stable_mosaic.version = 11 : i64} {
  func.func @_bn_stats_kernel(%arg0: memref<4x512xf32, #tpu.memory_space<vmem>>, %arg1: memref<4x1xf32, #tpu.memory_space<vmem>>, %arg2: memref<4x1xf32, #tpu.memory_space<vmem>>, %arg3: memref<4x1xf32, #tpu.memory_space<vmem>>, %arg4: memref<4x1xf32, #tpu.memory_space<vmem>>) attributes {dimension_semantics = [], scalar_prefetch = 0 : i64, scratch_operands = 0 : i64, tpu.core_type = #tpu.core_type<tc>} {
    %c0 = arith.constant 0 : index
    %c0_0 = arith.constant 0 : index
    %0 = vector.load %arg0[%c0, %c0_0] : memref<4x512xf32, #tpu.memory_space<vmem>>, vector<4x512xf32>
    %cst = arith.constant dense<0.000000e+00> : vector<4xf32>
    %1 = vector.multi_reduction <add>, %0, %cst [1] : vector<4x512xf32> to vector<4xf32>
    %2 = vector.shape_cast %1 : vector<4xf32> to vector<4x1xf32>
    %cst_1 = arith.constant 5.120000e+02 : f32
    %3 = vector.broadcast %cst_1 : f32 to vector<4x1xf32>
    %4 = arith.divf %2, %3 : vector<4x1xf32>
    %5 = vector.broadcast %4 : vector<4x1xf32> to vector<4x512xf32>
    %6 = arith.subf %0, %5 : vector<4x512xf32>
    %7 = arith.mulf %6, %6 : vector<4x512xf32>
    %cst_2 = arith.constant dense<0.000000e+00> : vector<4xf32>
    %8 = vector.multi_reduction <add>, %7, %cst_2 [1] : vector<4x512xf32> to vector<4xf32>
    %9 = vector.shape_cast %8 : vector<4xf32> to vector<4x1xf32>
    %cst_3 = arith.constant 5.120000e+02 : f32
    %10 = vector.broadcast %cst_3 : f32 to vector<4x1xf32>
    %11 = arith.divf %9, %10 : vector<4x1xf32>
    %c0_4 = arith.constant 0 : index
    %c0_5 = arith.constant 0 : index
    %12 = vector.load %arg1[%c0_4, %c0_5] : memref<4x1xf32, #tpu.memory_space<vmem>>, vector<4x1xf32>
    %cst_6 = arith.constant 9.99999974E-6 : f32
    %13 = vector.broadcast %cst_6 : f32 to vector<4x1xf32>
    %14 = arith.addf %11, %13 : vector<4x1xf32>
    %15 = math.rsqrt %14 : vector<4x1xf32>
    %16 = arith.mulf %12, %15 : vector<4x1xf32>
    %c0_7 = arith.constant 0 : index
    %c0_8 = arith.constant 0 : index
    %17 = vector.load %arg3[%c0_7, %c0_8] : memref<4x1xf32, #tpu.memory_space<vmem>>, vector<4x1xf32>
    tpu.vector_store %arg3[%c0_7, %c0_8], %16 {strides = array<i32>} : memref<4x1xf32, #tpu.memory_space<vmem>>, vector<4x1xf32>,
    %c0_9 = arith.constant 0 : index
    %c0_10 = arith.constant 0 : index
    %18 = vector.load %arg2[%c0_9, %c0_10] : memref<4x1xf32, #tpu.memory_space<vmem>>, vector<4x1xf32>
    %19 = arith.mulf %4, %16 : vector<4x1xf32>
    %20 = arith.subf %18, %19 : vector<4x1xf32>
    %c0_11 = arith.constant 0 : index
    %c0_12 = arith.constant 0 : index
    %21 = vector.load %arg4[%c0_11, %c0_12] : memref<4x1xf32, #tpu.memory_space<vmem>>, vector<4x1xf32>
    tpu.vector_store %arg4[%c0_11, %c0_12], %20 {strides = array<i32>} : memref<4x1xf32, #tpu.memory_space<vmem>>, vector<4x1xf32>,
    return
  }
}

</mosaic_0001>

<bundles_post_ra>
// kernel: tpu_custom_call.1
= control target key start
LH: loop header
LB: loop body
LE: loop exit
PB: predicated region body
PF: predicated region fallthrough
CT: control target
= control target key end

     0   :  { %10 = vsyncpa [#allocation3], 0  ;;  %s157_s18 = smov [#allocation2]   ;;  %s208_s0 = inlined_call_operand.hbm [shape: f32[4,512], index: 0, kind: input, shape index: {}]   ;;  %s209_s1 = inlined_call_operand.vmem [shape: f32[4,1], index: 1, kind: input, shape index: {}]   ;;  %s210_s2 = inlined_call_operand.vmem [shape: f32[4,1], index: 2, kind: input, shape index: {}]   ;;  %s211_s3 = inlined_call_operand.vmem [shape: f32[4,1], index: 3, kind: output, shape index: {0}]   ;;  %s212_s4 = inlined_call_operand.vmem [shape: f32[4,1], index: 4, kind: output, shape index: {1}]  }
   0x1   :  { %s16_s17 = sshll.u32 %s208_s0, 4  ;;  %s18_s19 = sshll.u32 %s157_s18, 4  ;;  %s17_s17 = int_to_ptr.hbm [resolvable:$true] %s16_s17  ;;  %s19_s19 = int_to_ptr.vmem [resolvable:$true] %s18_s19 }
   0x2   :  { %21 = dma.hbm_to_vmem [thread:$0]  %s17_s17, 256, %s19_s19, [#allocation3]  }
   0x3   :  { %155 = dma.done.wait [#allocation3], 256  }
   0x4   :  { %156 = vsyncadd [#allocation3], 4294967040  ;;  %v30_v0 = vld [vmem:[#allocation2] sm:$0xff]  ;;  %v31_v1 = vld [vmem:[#allocation2 + $0x8] sm:$0xff]  ;;  %vm45_vm0 = vcmask 1043456   ;;  %v158_v13 = vmov 512.0  }
   0x5   :  { %34 = vst [vmem:[#allocation1] ss:$2 sm:$0xff] %v30_v0  ;;  %127 = vrcp.f32 %v158_v13  ;;  %v159_v19 = vmov 839922192   ;;  %v96_v49 = vld [vmem:[%s209_s1] sm:$0xf] }
   0x6   :  { %36 = vst [vmem:[#allocation1 + $0x10] ss:$2 sm:$0xff] %v31_v1  ;;  %v65_v20 = vunpack.c.l.s4 %v159_v19  ;;  %vm109_vm5 = vcmask 3072   ;;  %v111_v53 = vld [vmem:[%s210_s2] sm:$0xf] }
   0x8   :  { %v66_v22 = vunpack.c.0.s8 %v65_v20 }
   0xb   :  { %v128_v14 = vpop.eup %127 }
   0xc   :  { %v37_v2 = vld.sshfl [vmem:[#allocation1] sm:$0xff pattern:$0x75316420]  ;;  %v38_v3 = vld.sshfl [vmem:[#allocation1 + $0x8] sm:$0xff pattern:$0x75316420]  ;;  %vm60_vm1 = vweird.f32 %v128_v14 }
   0xd   :  { %v39_v4 = vld.sshfl [vmem:[#allocation1 + $0x10] sm:$0xff pattern:$0x75316420]  ;;  %v40_v5 = vld.sshfl [vmem:[#allocation1 + $0x18] sm:$0xff pattern:$0x75316420] }
   0xe   :  { %v46_v6 = vsel %vm45_vm0, %v37_v2, 0.0  ;;  %v47_v7 = vsel %vm45_vm0, %v38_v3, 0.0  ;;  %v49_v8 = vsel %vm45_vm0, %v39_v4, 0.0  ;;  %v51_v10 = vsel %vm45_vm0, %v40_v5, 0.0 }
   0xf   :  { %v48_v9 = vadd.f32 %v47_v7, %v46_v6  ;;  %v56_v15 = vmul.f32 512.0, %v128_v14 }
  0x11   :  { %v50_v11 = vadd.f32 %v49_v8, %v48_v9  ;;  %v57_v16 = vsub.f32 1.0, %v56_v15 }
  0x13   :  { %v52_v12 = vadd.f32 %v51_v10, %v50_v11  ;;  %v58_v17 = vmul.f32 %v128_v14, %v57_v16 }
  0x15   :  { %53 = vadd.xlane.f32.xlu0 %v52_v12  ;;  %v59_v18 = vadd.f32 %v128_v14, %v58_v17 }
  0x17   :  { %v61_v21 = vsel %vm60_vm1, %v128_v14, %v59_v18 }
  0x88   :  { %v54_v23 = vpop.xlane.xlu0 %53 }
  0x89   :  { %v62_v24 = vmul.f32 %v61_v21, %v54_v23 }
  0x8b   :  { %v67_v25 = vperm.slane %v62_v24, %v66_v22 }
  0x8d   :  { %v69_v26 = vsub.f32 %v30_v0, %v67_v25  ;;  %v70_v27 = vsub.f32 %v31_v1, %v67_v25 }
  0x8f   :  { %v71_v28 = vmul.f32 %v69_v26, %v69_v26  ;;  %v72_v29 = vmul.f32 %v70_v27, %v70_v27 }
  0x91   :  { %75 = vst [vmem:[#allocation1] ss:$2 sm:$0xff] %v71_v28 }
  0x92   :  { %77 = vst [vmem:[#allocation1 + $0x10] ss:$2 sm:$0xff] %v72_v29 }
  0x98   :  { %v78_v30 = vld.sshfl [vmem:[#allocation1] sm:$0xff pattern:$0x75316420]  ;;  %v79_v31 = vld.sshfl [vmem:[#allocation1 + $0x8] sm:$0xff pattern:$0x75316420] }
  0x99   :  { %v80_v32 = vld.sshfl [vmem:[#allocation1 + $0x10] sm:$0xff pattern:$0x75316420]  ;;  %v86_v33 = vsel %vm45_vm0, %v78_v30, 0.0  ;;  %v87_v34 = vsel %vm45_vm0, %v79_v31, 0.0 }
  0x9a   :  { %v81_v35 = vld.sshfl [vmem:[#allocation1 + $0x18] sm:$0xff pattern:$0x75316420]  ;;  %v88_v36 = vadd.f32 %v87_v34, %v86_v33  ;;  %v89_v37 = vsel %vm45_vm0, %v80_v32, 0.0 }
  0x9b   :  { %v91_v39 = vsel %vm45_vm0, %v81_v35, 0.0 }
  0x9c   :  { %v90_v38 = vadd.f32 %v89_v37, %v88_v36 }
  0x9e   :  { %v92_v40 = vadd.f32 %v91_v39, %v90_v38 }
  0xa0   :  { %93 = vadd.xlane.f32.xlu0 %v92_v40 }
 0x113   :  { %v94_v41 = vpop.xlane.xlu0 %93 }
 0x114   :  { %v95_v42 = vmul.f32 %v94_v41, %v61_v21 }
 0x116   :  { %v97_v43 = vadd.f32 1e-05, %v95_v42 }
 0x118   :  { %129 = vrsqrt.f32 %v97_v43  ;;  %vm104_vm3 = vweird.f32 %v97_v43 }
 0x11e   :  { %v130_v44 = vpop.eup %129 }
 0x11f   :  { %v99_v45 = vmul.f32 %v130_v44, %v97_v43  ;;  %vm105_vm2 = vweird.f32 %v130_v44 }
 0x120   :  { %vm106_vm4 = vmor %vm104_vm3, %vm105_vm2 }
 0x121   :  { %v100_v46 = vmul.f32 %v130_v44, %v99_v45 }
 0x123   :  { %v101_v47 = vmul.f32 0.5, %v100_v46 }
 0x125   :  { %v102_v48 = vsub.f32 1.5, %v101_v47 }
 0x127   :  { %v103_v50 = vmul.f32 %v130_v44, %v102_v48 }
 0x129   :  { %v107_v51 = vsel %vm106_vm4, %v130_v44, %v103_v50 }
 0x12a   :  { %v108_v52 = vmul.f32 %v107_v51, %v96_v49 }
 0x12c   :  { %110 = vst.msk [vmem:[%s211_s3] sm:$0xf] %vm109_vm5, %v108_v52  ;;  %v112_v54 = vmul.f32 %v108_v52, %v62_v24 }
 0x12e   :  { %v113_v55 = vsub.f32 %v111_v53, %v112_v54 }
 0x130   :  { %114 = vst.msk [vmem:[%s212_s4] sm:$0xf] %vm109_vm5, %v113_v55 }
 0x131   :  { %123 = vsyncpa [#allocation3], 1 }

</bundles_post_ra>
